<compile_context>
chip_gen: v7x
topology: tpu7x:2x2x1
jax: 0.10.0
libtpu: 0.0.40
codegen_flags: <defaults>
</compile_context>

<pallas_src>
import jax
import jax.numpy as jnp
from jax.experimental import pallas as pl
from jax.experimental.pallas import tpu as pltpu

_LANE = 128
_SUB = 8


def _center_loss_kernel(pred_ref, gt_ref, out_ref):
    # pred_ref / gt_ref: (TM, 128) f32 VMEM tiles (lane-dense).
    # out_ref:           (2, 8, 128) f32 VMEM accumulator, resident across the
    #                    reduction grid axis; slab 0 = partial focal loss,
    #                    slab 1 = partial positive count.
    @pl.when(pl.program_id(1) == 0)
    def _init():
        out_ref[...] = jnp.zeros_like(out_ref)

    x = pred_ref[...]
    gt = gt_ref[...]

    pos_inds = (gt == 1.0).astype(jnp.float32)
    neg_inds = (gt < 1.0).astype(jnp.float32)
    one_m_gt = 1.0 - gt
    neg_weights = (one_m_gt * one_m_gt) * (one_m_gt * one_m_gt)

    # log-sigmoid reformulation (stable, fewer EUP pushes):
    #   softplus(x) = max(x,0) + log(1 + exp(-|x|))
    #   log(1 - p)  = -softplus(x)
    #   log(p)      = x - softplus(x)
    #   p           = exp(log p)
    sp = jnp.maximum(x, 0.0) + jnp.log(1.0 + jnp.exp(-jnp.abs(x)))
    log_1mp = -sp
    log_p = x - sp
    p = jnp.exp(log_p)
    one_m_p = 1.0 - p

    pos_loss = log_p * (one_m_p * one_m_p * one_m_p) * pos_inds
    neg_loss = log_1mp * (p * p * p) * neg_weights * neg_inds
    total = pos_loss + neg_loss  # single fused accumulator

    tm = total.shape[0]
    # (TM,128) -> (TM//8, 8, 128): the axis-0 sum is pure VPU vreg adds
    # (no per-step XLU tree reduce, no SMEM scalar RMW).
    out_ref[0] += total.reshape(tm // _SUB, _SUB, _LANE).sum(axis=0)
    out_ref[1] += pos_inds.reshape(tm // _SUB, _SUB, _LANE).sum(axis=0)


def center_loss(pred, gt, *, max_row_tile=1024, num_cores=2):
    """pred: (B, C, H, W) logits, gt: (B, H, W) heatmap targets -> scalar loss."""
    B, C, H, W = pred.shape
    assert gt.shape == (B, H, W)

    n = B * H * W
    rows = -(-n // _LANE)                                    # lane-dense rows
    # Don't split across cores if there isn't at least a sublane-tile per core.
    num_cores = max(1, min(num_cores, rows // _SUB))
    rows_per_core = -(-rows // num_cores)
    tm = min(max_row_tile, ((rows_per_core + _SUB - 1) // _SUB) * _SUB)
    rows_per_core = -(-rows_per_core // tm) * tm             # multiple of tm
    n_tiles = rows_per_core // tm
    padded = num_cores * rows_per_core * _LANE
    pad = padded - n

    # Channel-0 slice stays fused inside the same jit (no separately
    # materialized HBM round trip).  Padding uses neutral values: gt = 0 and a
    # very negative logit, so p**3 underflows to 0 and padded elements
    # contribute nothing to either accumulator.
    pred0 = pred[:, 0].astype(jnp.float32).reshape(-1)
    gtf = gt.astype(jnp.float32).reshape(-1)
    pred0 = jnp.pad(pred0, (0, pad), constant_values=-40.0)
    gtf = jnp.pad(gtf, (0, pad), constant_values=0.0)

    pred3 = pred0.reshape(num_cores, rows_per_core, _LANE)
    gt3 = gtf.reshape(num_cores, rows_per_core, _LANE)

    partials = pl.pallas_call(
        _center_loss_kernel,
        out_shape=jax.ShapeDtypeStruct((num_cores, 2, _SUB, _LANE), jnp.float32),
        grid_spec=pltpu.PrefetchScalarGridSpec(
            num_scalar_prefetch=0,
            grid=(num_cores, n_tiles),
            in_specs=[
                pl.BlockSpec((None, tm, _LANE), lambda p, t: (p, t, 0)),
                pl.BlockSpec((None, tm, _LANE), lambda p, t: (p, t, 0)),
            ],
            out_specs=pl.BlockSpec((None, 2, _SUB, _LANE), lambda p, t: (p, 0, 0, 0)),
        ),
        compiler_params=pltpu.CompilerParams(
            dimension_semantics=("parallel", "arbitrary"),
        ),
    )(pred3, gt3)

    sums = jnp.sum(partials, axis=(0, 2, 3))  # tiny (2,)-sized JAX epilogue
    loss_sum, num_pos = sums[0], sums[1]
    # if num_pos == 0: loss = -neg_loss  (pos part is identically 0 then)
    return jnp.where(num_pos == 0.0, -loss_sum,
                     -loss_sum / jnp.maximum(num_pos, 1.0))


def _reference_center_loss(pred, gt):
    """Pure-JAX reference mirroring the PyTorch module exactly."""
    p = jax.nn.sigmoid(pred[:, 0]).astype(jnp.float32)
    g = gt.astype(jnp.float32)
    pos_inds = (g == 1.0).astype(jnp.float32)
    neg_inds = (g < 1.0).astype(jnp.float32)
    neg_weights = (1.0 - g) ** 4
    pos_loss = jnp.log(p + 1e-12) * (1.0 - p) ** 3 * pos_inds
    neg_loss = jnp.log(1.0 - p + 1e-12) * (p ** 3) * neg_weights * neg_inds
    num_pos = jnp.sum(pos_inds)
    pos_loss = jnp.sum(pos_loss)
    neg_loss = jnp.sum(neg_loss)
    return jnp.where(num_pos == 0.0, -neg_loss, -(pos_loss + neg_loss) / num_pos)


if __name__ == "__main__":
    key = jax.random.PRNGKey(0)
    k1, k2 = jax.random.split(key)

    B, C, H, W = 2, 4, 16, 16
    pred = jax.random.normal(k1, (B, C, H, W), dtype=jnp.float32)

    # gt heatmap in [0, 1) with a few exact-1.0 keypoint centers
    gt = jax.random.uniform(k2, (B, H, W), dtype=jnp.float32, minval=0.0, maxval=0.99)
    gt = gt.at[0, 3, 5].set(1.0)
    gt = gt.at[0, 10, 12].set(1.0)
    gt = gt.at[1, 7, 7].set(1.0)

    loss_fn = jax.jit(center_loss)
    loss = jax.block_until_ready(loss_fn(pred, gt))

    ref = jax.block_until_ready(_reference_center_loss(pred, gt))
    assert jnp.allclose(loss, ref, rtol=1e-5, atol=1e-5), (loss, ref)

    print("KERNEL_OK")
</pallas_src>

<mosaic_0001>
module attributes {stable_mosaic.version = 11 : i64} {
  func.func @_center_loss_kernel(%arg0: i32, %arg1: i32, %arg2: memref<1x8x128xf32, #tpu.memory_space<vmem>>, %arg3: memref<1x8x128xf32, #tpu.memory_space<vmem>>, %arg4: memref<1x2x8x128xf32, #tpu.memory_space<vmem>>) attributes {dimension_semantics = [#tpu.dimension_semantics<parallel>, #tpu.dimension_semantics<arbitrary>], iteration_bounds = array<i64: 1, 1>, scalar_prefetch = 0 : i64, scratch_operands = 0 : i64, tpu.core_type = #tpu.core_type<tc>, window_params = [{transform_indices = @transform_0, window_bounds = array<i64: 1, 8, 128>}, {transform_indices = @transform_1, window_bounds = array<i64: 1, 8, 128>}, {transform_indices = @transform_2, window_bounds = array<i64: 1, 2, 8, 128>}]} {
    %c0_i32 = arith.constant 0 : i32
    %0 = arith.cmpi eq, %arg1, %c0_i32 : i32
    %1 = arith.extui %0 : i1 to i32
    %c0_i32_0 = arith.constant 0 : i32
    %2 = arith.cmpi ne, %1, %c0_i32_0 : i32
    scf.if %2 {
      %cst_30 = arith.constant 0.000000e+00 : f32
      %62 = vector.broadcast %cst_30 : f32 to vector<2x8x128xf32>
      %c0_31 = arith.constant 0 : index
      %c0_32 = arith.constant 0 : index
      %c0_33 = arith.constant 0 : index
      %c0_34 = arith.constant 0 : index
      %63 = vector.load %arg4[%c0_31, %c0_32, %c0_33, %c0_34] : memref<1x2x8x128xf32, #tpu.memory_space<vmem>>, vector<1x2x8x128xf32>
      %64 = vector.shape_cast %63 : vector<1x2x8x128xf32> to vector<2x8x128xf32>
      %65 = vector.shape_cast %62 : vector<2x8x128xf32> to vector<1x2x8x128xf32>
      tpu.vector_store %arg4[%c0_31, %c0_32, %c0_33, %c0_34], %65 {strides = array<i32>} : memref<1x2x8x128xf32, #tpu.memory_space<vmem>>, vector<1x2x8x128xf32>,
    } else {
    }
    %c0 = arith.constant 0 : index
    %c0_1 = arith.constant 0 : index
    %c0_2 = arith.constant 0 : index
    %3 = vector.load %arg2[%c0, %c0_1, %c0_2] : memref<1x8x128xf32, #tpu.memory_space<vmem>>, vector<1x8x128xf32>
    %4 = vector.shape_cast %3 : vector<1x8x128xf32> to vector<8x128xf32>
    %c0_3 = arith.constant 0 : index
    %c0_4 = arith.constant 0 : index
    %c0_5 = arith.constant 0 : index
    %5 = vector.load %arg3[%c0_3, %c0_4, %c0_5] : memref<1x8x128xf32, #tpu.memory_space<vmem>>, vector<1x8x128xf32>
    %6 = vector.shape_cast %5 : vector<1x8x128xf32> to vector<8x128xf32>
    %cst = arith.constant 1.000000e+00 : f32
    %7 = vector.broadcast %cst : f32 to vector<8x128xf32>
    %8 = arith.cmpf oeq, %6, %7 : vector<8x128xf32>
    %9 = arith.extui %8 : vector<8x128xi1> to vector<8x128xi32>
    %10 = arith.sitofp %9 : vector<8x128xi32> to vector<8x128xf32>
    %cst_6 = arith.constant 1.000000e+00 : f32
    %11 = vector.broadcast %cst_6 : f32 to vector<8x128xf32>
    %12 = arith.cmpf olt, %6, %11 : vector<8x128xf32>
    %13 = arith.extui %12 : vector<8x128xi1> to vector<8x128xi32>
    %14 = arith.sitofp %13 : vector<8x128xi32> to vector<8x128xf32>
    %cst_7 = arith.constant 1.000000e+00 : f32
    %15 = vector.broadcast %cst_7 : f32 to vector<8x128xf32>
    %16 = arith.subf %15, %6 : vector<8x128xf32>
    %17 = arith.mulf %16, %16 : vector<8x128xf32>
    %18 = arith.mulf %16, %16 : vector<8x128xf32>
    %19 = arith.mulf %17, %18 : vector<8x128xf32>
    %cst_8 = arith.constant 0.000000e+00 : f32
    %20 = vector.broadcast %cst_8 : f32 to vector<8x128xf32>
    %21 = arith.maximumf %4, %20 : vector<8x128xf32>
    %22 = math.absf %4 : vector<8x128xf32>
    %cst_9 = arith.constant 0.000000e+00 : f32
    %23 = vector.broadcast %cst_9 : f32 to vector<8x128xf32>
    %24 = arith.subf %23, %22 : vector<8x128xf32>
    %25 = math.exp %24 : vector<8x128xf32>
    %cst_10 = arith.constant 1.000000e+00 : f32
    %26 = vector.broadcast %cst_10 : f32 to vector<8x128xf32>
    %27 = arith.addf %26, %25 : vector<8x128xf32>
    %28 = math.log %27 : vector<8x128xf32>
    %29 = arith.addf %21, %28 : vector<8x128xf32>
    %cst_11 = arith.constant 0.000000e+00 : f32
    %30 = vector.broadcast %cst_11 : f32 to vector<8x128xf32>
    %31 = arith.subf %30, %29 : vector<8x128xf32>
    %32 = arith.subf %4, %29 : vector<8x128xf32>
    %33 = math.exp %32 : vector<8x128xf32>
    %cst_12 = arith.constant 1.000000e+00 : f32
    %34 = vector.broadcast %cst_12 : f32 to vector<8x128xf32>
    %35 = arith.subf %34, %33 : vector<8x128xf32>
    %36 = arith.mulf %35, %35 : vector<8x128xf32>
    %37 = arith.mulf %36, %35 : vector<8x128xf32>
    %38 = arith.mulf %32, %37 : vector<8x128xf32>
    %39 = arith.mulf %38, %10 : vector<8x128xf32>
    %40 = arith.mulf %33, %33 : vector<8x128xf32>
    %41 = arith.mulf %40, %33 : vector<8x128xf32>
    %42 = arith.mulf %31, %41 : vector<8x128xf32>
    %43 = arith.mulf %42, %19 : vector<8x128xf32>
    %44 = arith.mulf %43, %14 : vector<8x128xf32>
    %45 = arith.addf %39, %44 : vector<8x128xf32>
    %c0_13 = arith.constant 0 : index
    %c0_14 = arith.constant 0 : index
    %c0_15 = arith.constant 0 : index
    %c0_16 = arith.constant 0 : index
    %46 = vector.load %arg4[%c0_13, %c0_14, %c0_15, %c0_16] : memref<1x2x8x128xf32, #tpu.memory_space<vmem>>, vector<1x1x8x128xf32>
    %47 = vector.shape_cast %46 : vector<1x1x8x128xf32> to vector<8x128xf32>
    %48 = vector.shape_cast %45 : vector<8x128xf32> to vector<1x8x128xf32>
    %cst_17 = arith.constant dense<0.000000e+00> : vector<8x128xf32>
    %49 = vector.multi_reduction <add>, %48, %cst_17 [0] : vector<1x8x128xf32> to vector<8x128xf32>
    %50 = arith.addf %47, %49 : vector<8x128xf32>
    %c0_18 = arith.constant 0 : index
    %c0_19 = arith.constant 0 : index
    %c0_20 = arith.constant 0 : index
    %c0_21 = arith.constant 0 : index
    %51 = vector.load %arg4[%c0_18, %c0_19, %c0_20, %c0_21] : memref<1x2x8x128xf32, #tpu.memory_space<vmem>>, vector<1x1x8x128xf32>
    %52 = vector.shape_cast %51 : vector<1x1x8x128xf32> to vector<8x128xf32>
    %53 = vector.shape_cast %50 : vector<8x128xf32> to vector<1x1x8x128xf32>
    tpu.vector_store %arg4[%c0_18, %c0_19, %c0_20, %c0_21], %53 {strides = array<i32>} : memref<1x2x8x128xf32, #tpu.memory_space<vmem>>, vector<1x1x8x128xf32>,
    %c0_22 = arith.constant 0 : index
    %c1 = arith.constant 1 : index
    %c0_23 = arith.constant 0 : index
    %c0_24 = arith.constant 0 : index
    %54 = vector.load %arg4[%c0_22, %c1, %c0_23, %c0_24] : memref<1x2x8x128xf32, #tpu.memory_space<vmem>>, vector<1x1x8x128xf32>
    %55 = vector.shape_cast %54 : vector<1x1x8x128xf32> to vector<8x128xf32>
    %56 = vector.shape_cast %10 : vector<8x128xf32> to vector<1x8x128xf32>
    %cst_25 = arith.constant dense<0.000000e+00> : vector<8x128xf32>
    %57 = vector.multi_reduction <add>, %56, %cst_25 [0] : vector<1x8x128xf32> to vector<8x128xf32>
    %58 = arith.addf %55, %57 : vector<8x128xf32>
    %c0_26 = arith.constant 0 : index
    %c1_27 = arith.constant 1 : index
    %c0_28 = arith.constant 0 : index
    %c0_29 = arith.constant 0 : index
    %59 = vector.load %arg4[%c0_26, %c1_27, %c0_28, %c0_29] : memref<1x2x8x128xf32, #tpu.memory_space<vmem>>, vector<1x1x8x128xf32>
    %60 = vector.shape_cast %59 : vector<1x1x8x128xf32> to vector<8x128xf32>
    %61 = vector.shape_cast %58 : vector<8x128xf32> to vector<1x1x8x128xf32>
    tpu.vector_store %arg4[%c0_26, %c1_27, %c0_28, %c0_29], %61 {strides = array<i32>} : memref<1x2x8x128xf32, #tpu.memory_space<vmem>>, vector<1x1x8x128xf32>,
    return
  }
  func.func @transform_0(%arg0: i32, %arg1: i32) -> (i32, i32, i32) {
    %c0_i32 = arith.constant 0 : i32
    %c0_i32_0 = arith.constant 0 : i32
    return %arg0, %arg1, %c0_i32 : i32, i32, i32
  }
  func.func @transform_1(%arg0: i32, %arg1: i32) -> (i32, i32, i32) {
    %c0_i32 = arith.constant 0 : i32
    %c0_i32_0 = arith.constant 0 : i32
    return %arg0, %arg1, %c0_i32 : i32, i32, i32
  }
  func.func @transform_2(%arg0: i32, %arg1: i32) -> (i32, i32, i32, i32) {
    %c0_i32 = arith.constant 0 : i32
    %c0_i32_0 = arith.constant 0 : i32
    %c0_i32_1 = arith.constant 0 : i32
    %c0_i32_2 = arith.constant 0 : i32
    return %arg0, %c0_i32, %c0_i32_0, %c0_i32_1 : i32, i32, i32, i32
  }
}

</mosaic_0001>

<bundles_post_ra>
// kernel: squeeze.3
= control target key start
LH: loop header
LB: loop body
LE: loop exit
PB: predicated region body
PF: predicated region fallthrough
CT: control target
= control target key end

     0   :  { %s67_s8 = smov 112   ;;  %s68_s11 = smov 80   ;;  %vm3_vm0 = vcmask 130048   ;;  %vm9_vm1 = vcmask 1048448   ;;  %vm15_vm2 = vcmask 917248   ;;  %vm21_vm3 = vcmask 786048   ;;  %s111_s0 = inlined_call_operand.vmem [shape: f32[2,1,16,16], index: 0, kind: input, shape index: {}]   ;;  %s112_s1 = inlined_call_operand.vmem [shape: f32[512], index: 1, kind: output, shape index: {}]  }
   0x1   :  { %v53_v0 = vld [vmem:[%s111_s0 + $0x7] ss:$8 sm:$0xf]   ;;  %v55_v1 = vld [vmem:[%s111_s0 + $0x5] ss:$8 sm:$0xf]  }
   0x2   :  { %7 = vrot.lane.b32.xlu0 %v53_v0, %s67_s8  ;;  %19 = vrot.lane.b32.xlu1 %v55_v1, %s68_s11  ;;  %v54_v2 = vld [vmem:[%s111_s0 + $0x6] ss:$8 sm:$0xf]   ;;  %v56_v3 = vld [vmem:[%s111_s0 + $0x4] ss:$8 sm:$0xf]  }
   0x3   :  { %s69_s16 = smov 96   ;;  %v2_v4 = vld [vmem:[%s111_s0] ss:$8 sm:$0xf]   ;;  %s70_s19 = smov 64   ;;  %vm27_vm4 = vcmask 654848  }
   0x4   :  { %v57_v5 = vld [vmem:[%s111_s0 + $0x3] ss:$8 sm:$0xf]   ;;  %4 = vst.msk [vmem:[#allocation0] sm:$0xf] %vm3_vm0, %v2_v4   ;;  %s71_s24 = smov 48  }
   0x5   :  { %v58_v6 = vld [vmem:[%s111_s0 + $0x2] ss:$8 sm:$0xf]   ;;  %s72_s25 = smov 32   ;;  %vm33_vm5 = vcmask 523648   ;;  %vm39_vm6 = vcmask 392448  }
   0x6   :  { %13 = vrot.lane.b32.xlu0 %v54_v2, %s69_s16  ;;  %25 = vrot.lane.b32.xlu1 %v56_v3, %s70_s19  ;;  %v59_v7 = vld [vmem:[%s111_s0 + $0x1] ss:$8 sm:$0xf]   ;;  %s73_s0 = smov 16   ;;  %vm45_vm7 = vcmask 261248  }
   0xa   :  { %31 = vrot.lane.b32.xlu0 %v57_v5, %s71_s24  ;;  %37 = vrot.lane.b32.xlu1 %v58_v6, %s72_s25 }
   0xe   :  { %43 = vrot.lane.b32.xlu0 %v59_v7, %s73_s0 }
  0x74   :  { %v8_v8 = vpop.permute.xlu0 %7   ;;  %v20_v9 = vpop.permute.xlu1 %19  }
  0x75   :  { %10 = vst.msk [vmem:[#allocation0] sm:$0xf] %vm9_vm1, %v8_v8  }
  0x78   :  { %v14_v10 = vpop.permute.xlu0 %13   ;;  %v26_v11 = vpop.permute.xlu1 %25  }
  0x79   :  { %16 = vst.msk [vmem:[#allocation0] sm:$0xf] %vm15_vm2, %v14_v10  }
  0x7a   :  { %22 = vst.msk [vmem:[#allocation0] sm:$0xf] %vm21_vm3, %v20_v9  }
  0x7b   :  { %28 = vst.msk [vmem:[#allocation0] sm:$0xf] %vm27_vm4, %v26_v11  }
  0x7c   :  { %v32_v12 = vpop.permute.xlu0 %31   ;;  %v38_v13 = vpop.permute.xlu1 %37  }
  0x7d   :  { %34 = vst.msk [vmem:[#allocation0] sm:$0xf] %vm33_vm5, %v32_v12  }
  0x7e   :  { %40 = vst.msk [vmem:[#allocation0] sm:$0xf] %vm39_vm6, %v38_v13  }
  0x80   :  { %v44_v14 = vpop.permute.xlu0 %43  }
  0x81   :  { %46 = vst.msk [vmem:[#allocation0] sm:$0xf] %vm45_vm7, %v44_v14  }
  0x88   :  { %v50_v15 = vld [vmem:[#allocation0] sm:$0xf] }
  0x89   :  { %52 = vst [vmem:[%s112_s1] sm:$0xf] %v50_v15 }

// kernel: center_loss.1
= control target key start
LH: loop header
LB: loop body
LE: loop exit
PB: predicated region body
PF: predicated region fallthrough
CT: control target
= control target key end

     0   :  { %v76_v2 = vmov 0.0   ;;  %s104_s1 = inlined_call_operand.vmem [shape: f32[1,8,128], index: 1, kind: input, shape index: {}]   ;;  %s105_s0 = inlined_call_operand.vmem [shape: f32[1,8,128], index: 0, kind: input, shape index: {}]   ;;  %s106_s2 = inlined_call_operand.vmem [shape: f32[1,2,8,128], index: 2, kind: output, shape index: {}]  }
   0x1   :  { %v18_v0 = vld [vmem:[%s104_s1] sm:$0xff] }
   0x2   :  { %v17_v1 = vld [vmem:[%s105_s0] sm:$0xff]  ;;  %vm19_vm0 = vcmp.eq.f32.partialorder %v18_v0, 1.0  ;;  %v25_v15 = vsub.f32 1.0, %v18_v0  ;;  %vm22_vm1 = vcmp.lt.f32.partialorder %v18_v0, 1.0 }
   0x3   :  { %v65_v3 = vsel %vm19_vm0, 1.0, %v76_v2  ;;  %v29_v4 = vand.u32 2147483647, %v17_v1  ;;  %v28_v9 = vmax.f32 %v17_v1, 0.0  ;;  %v66_v26 = vsel %vm22_vm1, 1.0, %v76_v2 }
   0x4   :  { %68 = vst [vmem:[%s106_s2 + $0x8] sm:$0xff] %v65_v3  ;;  %v26_v16 = vmul.f32 %v25_v15, %v25_v15 }
   0x5   :  { %v30_v5 = vsub.f32 0.0, %v29_v4 }
   0x6   :  { %v27_v21 = vmul.f32 %v26_v16, %v26_v16 }
   0x7   :  { %v31_v6 = vmul.f32 1.442695, %v30_v5 }
   0x9   :  { %70 = vpow2.f32 %v31_v6 }
  0x13   :  { %v71_v7 = vpop.eup %70 }
  0x14   :  { %v33_v8 = vadd.f32 1.0, %v71_v7 }
  0x16   :  { %72 = vlog2.f32 %v33_v8 }
  0x20   :  { %v73_v10 = vpop.eup %72 }
  0x21   :  { %v35_v11 = vmul.f32 0.6931472, %v73_v10 }
  0x23   :  { %v36_v12 = vadd.f32 %v35_v11, %v28_v9 }
  0x25   :  { %v38_v13 = vsub.f32 %v17_v1, %v36_v12  ;;  %v37_v18 = vsub.f32 0.0, %v36_v12 }
  0x27   :  { %v39_v14 = vmul.f32 1.442695, %v38_v13 }
  0x29   :  { %74 = vpow2.f32 %v39_v14 }
  0x33   :  { %v75_v17 = vpop.eup %74 }
  0x34   :  { %v41_v19 = vsub.f32 1.0, %v75_v17  ;;  %v46_v20 = vmul.f32 %v75_v17, %v75_v17 }
  0x36   :  { %v42_v22 = vmul.f32 %v41_v19, %v41_v19  ;;  %v47_v23 = vmul.f32 %v75_v17, %v46_v20 }
  0x38   :  { %v43_v24 = vmul.f32 %v42_v22, %v41_v19  ;;  %v48_v25 = vmul.f32 %v47_v23, %v37_v18 }
  0x3a   :  { %v44_v27 = vmul.f32 %v43_v24, %v38_v13  ;;  %v49_v28 = vmul.f32 %v48_v25, %v27_v21 }
  0x3c   :  { %v45_v29 = vmul.f32 %v65_v3, %v44_v27  ;;  %v50_v30 = vmul.f32 %v66_v26, %v49_v28 }
  0x3e   :  { %v51_v31 = vadd.f32 %v50_v30, %v45_v29 }
  0x40   :  { %55 = vst [vmem:[%s106_s2] sm:$0xff] %v51_v31 }

</bundles_post_ra>
